<compile_context>
chip_gen: v6e
topology: v6e:2x2x1
jax: 0.10.0
libtpu: 0.0.40
codegen_flags: <defaults>
</compile_context>

<pallas_src>
import jax
import jax.numpy as jnp
from jax.experimental import pallas as pl
from jax.experimental.pallas import tpu as pltpu


# --------------------------------------------------------------------------
# Kernel
# --------------------------------------------------------------------------
def _classifier_kernel(x_ref, w_ref, b_ref, out_ref, acc_ref):
    """Fused global-average-pool + fc for one (batch-tile, hw-chunk) step.

    Grid: (batch_tiles, hw_chunks); hw_chunks is the reduction axis (last).

    x_ref  : (TB, C, HW_CHUNK) input tile, spatial dim on the lane axis
    w_ref  : (C, K)            f32 fc weight with 1/(H*W) folded in
    b_ref  : (1, K)            f32 fc bias
    out_ref: (TB, K)           logits (written on the last hw chunk)
    acc_ref: (TB, C)           f32 pooled-sum accumulator (VMEM scratch)
    """
    s = pl.program_id(1)

    @pl.when(s == 0)
    def _init():
        acc_ref[...] = jnp.zeros_like(acc_ref)

    # Global average pool == lane-axis sum (mean scale is folded into w_ref).
    acc_ref[...] += jnp.sum(x_ref[...].astype(jnp.float32), axis=-1)

    @pl.when(s == pl.num_programs(1) - 1)
    def _finalize():
        logits = jnp.dot(acc_ref[...], w_ref[...],
                         preferred_element_type=jnp.float32)
        out_ref[...] = (logits + b_ref[...]).astype(out_ref.dtype)


# --------------------------------------------------------------------------
# Trace-time tiling heuristics (all plain Python on static shapes)
# --------------------------------------------------------------------------
def _ceil_div(a, b):
    return -(-a // b)


def _tpu_budgets():
    """(target bytes of x per grid step, scoped VMEM limit) per generation."""
    kind = ""
    try:
        kind = jax.devices()[0].device_kind.lower()
    except Exception:  # pragma: no cover - e.g. no devices during tracing
        pass
    if "v7" in kind:
        return 12 * 2**20, 48 * 2**20   # 64 MiB physical VMEM -> stay well under
    if "v6" in kind:
        return 6 * 2**20, 64 * 2**20
    if "v5" in kind:
        return 3 * 2**20, 32 * 2**20
    return 4 * 2**20, 32 * 2**20


def _pick_hw_chunk(hw, c, itemsize, row_budget_bytes):
    """Largest HW chunk that divides HW, is a multiple of 128 (or HW itself),
    and keeps one (row x C x chunk) slab within the per-row byte budget."""
    if c * hw * itemsize <= row_budget_bytes or hw % 128 != 0 or hw <= 128:
        # Small enough already, or cannot split on a clean 128-lane boundary.
        # TODO(synk): HW not a multiple of 128 with a multi-MiB per-sample map
        # would need lane padding of x to split further; not needed here.
        return hw
    cands = [d for d in range(128, hw, 128) if hw % d == 0]
    if not cands:
        return hw
    under = [d for d in cands if c * d * itemsize <= row_budget_bytes]
    return max(under) if under else min(cands)


def _pick_batch_tile(n, bytes_per_row, tile_budget_bytes):
    """Batch rows per grid step: multiple of 8 (layout-legal output block) or
    the full batch for tiny N; capped so there are >=2 batch tiles (megacore)."""
    budget_rows = max(1, tile_budget_bytes // max(bytes_per_row, 1))
    want = min(budget_rows, _ceil_div(n, 2)) if n >= 2 else 1
    tb = (want // 8) * 8
    if tb == 0:
        tb = 8 if (n > 8 and budget_rows >= 8) else n
    return tb


# --------------------------------------------------------------------------
# Wrapper
# --------------------------------------------------------------------------
@jax.jit
def _classifier_forward_impl(x_nchw, fc_w, fc_b):
    """x_nchw: (N, C, H, W); fc_w: (K, C) PyTorch layout; fc_b: (K,)."""
    n, c, h, w = x_nchw.shape
    k = fc_w.shape[0]
    hw = h * w
    itemsize = jnp.dtype(x_nchw.dtype).itemsize

    target_tile_bytes, vmem_limit = _tpu_budgets()

    # Split H*W so that even an 8-row batch tile stays within the byte budget.
    hw_chunk = _pick_hw_chunk(hw, c, itemsize, max(target_tile_bytes // 8, 1))
    n_hw_chunks = hw // hw_chunk

    bytes_per_row = c * hw_chunk * itemsize
    tb = _pick_batch_tile(n, bytes_per_row, target_tile_bytes)

    # Make sure the (rare) oversized-tile fallback still has VMEM headroom.
    tile_bytes = tb * bytes_per_row
    vmem_limit = max(vmem_limit, int(2.5 * tile_bytes) + (2 << 20))

    # ---- wrapper-side folding / free reshapes (no transposes, no pads) ----
    x3 = x_nchw.reshape(n, c, hw)                                # free NCHW view
    w_scaled = fc_w.T.astype(jnp.float32) * (1.0 / hw)           # (C, K), f32
    b2 = fc_b.reshape(1, k).astype(jnp.float32)                  # (1, K), f32

    grid = (pl.cdiv(n, tb), n_hw_chunks)   # short last batch tile is masked

    out = pl.pallas_call(
        _classifier_kernel,
        out_shape=jax.ShapeDtypeStruct((n, k), x_nchw.dtype),
        grid_spec=pltpu.PrefetchScalarGridSpec(
            num_scalar_prefetch=0,
            grid=grid,
            in_specs=[
                pl.BlockSpec((tb, c, hw_chunk), lambda b, s: (b, 0, s)),
                pl.BlockSpec((c, k), lambda b, s: (0, 0)),
                pl.BlockSpec((1, k), lambda b, s: (0, 0)),
            ],
            out_specs=pl.BlockSpec((tb, k), lambda b, s: (b, 0)),
            scratch_shapes=[pltpu.VMEM((tb, c), jnp.float32)],
        ),
        compiler_params=pltpu.CompilerParams(
            dimension_semantics=("parallel", "arbitrary"),
            vmem_limit_bytes=int(vmem_limit)),
    )(x3, w_scaled, b2)
    return out


def classifier_forward(x, fc_w, fc_b):
    """Mirrors ClassifierModule.forward: accepts a tensor or a list (uses x[0])."""
    if isinstance(x, (list, tuple)):
        x = x[0]
    return _classifier_forward_impl(x, fc_w, fc_b)


def _reference(x_nchw, fc_w, fc_b):
    """Pure-JAX reference: adaptive avg pool to (1,1), flatten, linear."""
    pooled = jnp.mean(x_nchw, axis=(2, 3))              # (N, C)
    return pooled @ fc_w.T + fc_b                       # (N, K)


if __name__ == "__main__":
    key = jax.random.PRNGKey(0)
    k_x, k_w, k_b = jax.random.split(key, 3)

    # Small shapes consistent with ClassifierModule(channel=4, num_classes=10)
    N, C, H, W = 2, 4, 16, 16
    NUM_CLASSES = 10

    x = jax.random.normal(k_x, (N, C, H, W), dtype=jnp.float32)
    fc_w = jax.random.normal(k_w, (NUM_CLASSES, C), dtype=jnp.float32) * 0.1
    fc_b = jax.random.normal(k_b, (NUM_CLASSES,), dtype=jnp.float32) * 0.1

    # List input path (the module takes x[0] when given a list).
    out_list = classifier_forward([x, x], fc_w, fc_b)
    jax.block_until_ready(out_list)

    # Plain-tensor input path.
    out_tensor = classifier_forward(x, fc_w, fc_b)
    jax.block_until_ready(out_tensor)

    ref = _reference(x, fc_w, fc_b)
    assert out_list.shape == (N, NUM_CLASSES), (out_list.shape,)
    assert jnp.allclose(out_list, ref, atol=1e-5, rtol=1e-5)
    assert jnp.allclose(out_tensor, ref, atol=1e-5, rtol=1e-5)

    print("KERNEL_OK")
</pallas_src>

<mosaic_0001>
module attributes {stable_mosaic.version = 11 : i64} {
  func.func @_classifier_kernel(%arg0: i32, %arg1: i32, %arg2: memref<2x4x256xf32, #tpu.memory_space<vmem>>, %arg3: memref<4x10xf32, #tpu.memory_space<vmem>>, %arg4: memref<1x10xf32, #tpu.memory_space<vmem>>, %arg5: memref<2x10xf32, #tpu.memory_space<vmem>>, %arg6: memref<2x4xf32, #tpu.memory_space<vmem>>) attributes {dimension_semantics = [#tpu.dimension_semantics<parallel>, #tpu.dimension_semantics<arbitrary>], iteration_bounds = array<i64: 1, 1>, scalar_prefetch = 0 : i64, scratch_operands = 1 : i64, tpu.core_type = #tpu.core_type<tc>, window_params = [{transform_indices = @transform_0, window_bounds = array<i64: 2, 4, 256>}, {pipeline_mode = #tpu.pipeline_mode<synchronous>, transform_indices = @transform_1, window_bounds = array<i64: 4, 10>}, {pipeline_mode = #tpu.pipeline_mode<synchronous>, transform_indices = @transform_2, window_bounds = array<i64: 1, 10>}, {transform_indices = @transform_3, window_bounds = array<i64: 2, 10>}]} {
    %c0_i32 = arith.constant 0 : i32
    %0 = arith.cmpi eq, %arg1, %c0_i32 : i32
    %1 = arith.extui %0 : i1 to i32
    %c0_i32_0 = arith.constant 0 : i32
    %2 = arith.cmpi ne, %1, %c0_i32_0 : i32
    scf.if %2 {
      %cst_9 = arith.constant 0.000000e+00 : f32
      %11 = vector.broadcast %cst_9 : f32 to vector<2x4xf32>
      %c0_10 = arith.constant 0 : index
      %c0_11 = arith.constant 0 : index
      %12 = vector.load %arg6[%c0_10, %c0_11] : memref<2x4xf32, #tpu.memory_space<vmem>>, vector<2x4xf32>
      tpu.vector_store %arg6[%c0_10, %c0_11], %11 {strides = array<i32>} : memref<2x4xf32, #tpu.memory_space<vmem>>, vector<2x4xf32>,
    } else {
    }
    %c0 = arith.constant 0 : index
    %c0_1 = arith.constant 0 : index
    %3 = vector.load %arg6[%c0, %c0_1] : memref<2x4xf32, #tpu.memory_space<vmem>>, vector<2x4xf32>
    %c0_2 = arith.constant 0 : index
    %c0_3 = arith.constant 0 : index
    %c0_4 = arith.constant 0 : index
    %4 = vector.load %arg2[%c0_2, %c0_3, %c0_4] : memref<2x4x256xf32, #tpu.memory_space<vmem>>, vector<2x4x256xf32>
    %cst = arith.constant dense<0.000000e+00> : vector<2x4xf32>
    %5 = vector.multi_reduction <add>, %4, %cst [2] : vector<2x4x256xf32> to vector<2x4xf32>
    %6 = arith.addf %3, %5 : vector<2x4xf32>
    %c0_5 = arith.constant 0 : index
    %c0_6 = arith.constant 0 : index
    %7 = vector.load %arg6[%c0_5, %c0_6] : memref<2x4xf32, #tpu.memory_space<vmem>>, vector<2x4xf32>
    tpu.vector_store %arg6[%c0_5, %c0_6], %6 {strides = array<i32>} : memref<2x4xf32, #tpu.memory_space<vmem>>, vector<2x4xf32>,
    %c0_i32_7 = arith.constant 0 : i32
    %8 = arith.cmpi eq, %arg1, %c0_i32_7 : i32
    %9 = arith.extui %8 : i1 to i32
    %c0_i32_8 = arith.constant 0 : i32
    %10 = arith.cmpi ne, %9, %c0_i32_8 : i32
    scf.if %10 {
      %c0_9 = arith.constant 0 : index
      %c0_10 = arith.constant 0 : index
      %11 = vector.load %arg6[%c0_9, %c0_10] : memref<2x4xf32, #tpu.memory_space<vmem>>, vector<2x4xf32>
      %c0_11 = arith.constant 0 : index
      %c0_12 = arith.constant 0 : index
      %12 = vector.load %arg3[%c0_11, %c0_12] : memref<4x10xf32, #tpu.memory_space<vmem>>, vector<4x10xf32>
      %cst_13 = arith.constant dense<0.000000e+00> : vector<2x10xf32>
      %13 = tpu.matmul %11, %12, %cst_13 {dimension_numbers = #tpu.dot_dimension_numbers<[1], [0], [0], [1], [0, 0, 1, 1], [], []>} : vector<2x4xf32>, vector<4x10xf32>, vector<2x10xf32> -> vector<2x10xf32>
      %c0_14 = arith.constant 0 : index
      %c0_15 = arith.constant 0 : index
      %14 = vector.load %arg4[%c0_14, %c0_15] : memref<1x10xf32, #tpu.memory_space<vmem>>, vector<1x10xf32>
      %15 = vector.broadcast %14 : vector<1x10xf32> to vector<2x10xf32>
      %16 = arith.addf %13, %15 : vector<2x10xf32>
      %c0_16 = arith.constant 0 : index
      %c0_17 = arith.constant 0 : index
      %17 = vector.load %arg5[%c0_16, %c0_17] : memref<2x10xf32, #tpu.memory_space<vmem>>, vector<2x10xf32>
      tpu.vector_store %arg5[%c0_16, %c0_17], %16 {strides = array<i32>} : memref<2x10xf32, #tpu.memory_space<vmem>>, vector<2x10xf32>,
    } else {
    }
    return
  }
  func.func @transform_0(%arg0: i32, %arg1: i32) -> (i32, i32, i32) {
    %c0_i32 = arith.constant 0 : i32
    %c0_i32_0 = arith.constant 0 : i32
    return %arg0, %c0_i32, %arg1 : i32, i32, i32
  }
  func.func @transform_1(%arg0: i32, %arg1: i32) -> (i32, i32) {
    %c0_i32 = arith.constant 0 : i32
    %c0_i32_0 = arith.constant 0 : i32
    %c0_i32_1 = arith.constant 0 : i32
    return %c0_i32, %c0_i32_0 : i32, i32
  }
  func.func @transform_2(%arg0: i32, %arg1: i32) -> (i32, i32) {
    %c0_i32 = arith.constant 0 : i32
    %c0_i32_0 = arith.constant 0 : i32
    %c0_i32_1 = arith.constant 0 : i32
    return %c0_i32, %c0_i32_0 : i32, i32
  }
  func.func @transform_3(%arg0: i32, %arg1: i32) -> (i32, i32) {
    %c0_i32 = arith.constant 0 : i32
    %c0_i32_0 = arith.constant 0 : i32
    return %arg0, %c0_i32 : i32, i32
  }
}

</mosaic_0001>

<bundles_post_ra>
// kernel: _classifier_forward_impl.1
= control target key start
LH: loop header
LB: loop body
LE: loop exit
PB: predicated region body
PF: predicated region fallthrough
CT: control target
= control target key end

     0   :  { %vm30_vm0 = vcmask 1043456   ;;  %s246_s0 = inlined_call_operand.vmem [shape: f32[2,4,256], index: 0, kind: input, shape index: {}]   ;;  %s247_s1 = inlined_call_operand.vmem [shape: f32[4,10], index: 1, kind: input, shape index: {}]   ;;  %s248_s2 = inlined_call_operand.vmem [shape: f32[1,10], index: 2, kind: input, shape index: {}]   ;;  %s249_s3 = inlined_call_operand.hbm [shape: f32[2,10], index: 3, kind: output, shape index: {}]  }
   0x1   :  { %v22_v0 = vld [vmem:[%s246_s0] sm:$0xff]  ;;  %v23_v1 = vld [vmem:[%s246_s0 + $0x8] sm:$0xff] }
   0x2   :  { %8 = vsyncpa [#allocation4], 0  ;;  %v26_v2 = vcombine.high %v22_v0, %v22_v0  ;;  %v31_v3 = vsel %vm30_vm0, %v22_v0, 0.0  ;;  %v27_v4 = vcombine.high %v23_v1, %v23_v1  ;;  %v36_v6 = vsel %vm30_vm0, %v23_v1, 0.0  ;;  %v63_v11 = vld [vmem:[%s247_s1] sm:$0xf] }
   0x3   :  { %vm19_vm1 = vcmask 25600   ;;  %v201_v10 = vmov 0.0   ;;  %vm202_vm2 = vmmov 0   ;;  %v43_v12 = vlaneseq  ;;  %v164_v24 = vld [vmem:[%s248_s2] ss:$0 sm:$0xff]  ;;  %s203_s18 = smov [#allocation3]  }
   0x4   :  { %v32_v5 = vsel %vm30_vm0, %v26_v2, 0.0  ;;  %v37_v7 = vsel %vm30_vm0, %v27_v4, 0.0  ;;  %20 = vst.msk [vmem:[#allocation2] sm:$0x3] %vm19_vm1, %v201_v10  ;;  %169 = vmatprep.subr.mxu0 %v201_v10  ;;  %171 = vmatprep.mubr.msk.f32.mxu0 %vm202_vm2, %v201_v10  ;;  %vm53_vm3 = vcmask 1041409   ;;  %vm71_vm4 = vcmask 31744  }
   0x5   :  { %v33_v8 = vadd.f32 %v32_v5, %v31_v3  ;;  %v38_v9 = vadd.f32 %v37_v7, %v36_v6  ;;  %170 = vmatpush3.msk.msra.mxu0 %vm30_vm0, %v63_v11  ;;  %v44_v13 = vand.u32 127, %v43_v12  ;;  %v46_v14 = vshrl.u32 %v43_v12, 7  ;;  %s156_s19 = sshll.u32 %s203_s18, 4  ;;  %s157_s19 = int_to_ptr.vmem [resolvable:$true] %s156_s19 }
   0x6   :  { %vm148_vm5 = vcmask 74752   ;;  %s179_s20 = scalar_lea.vmem %s157_s19, 32  ;;  %p184_p1 = scmp.lt.s32.totalorder %s157_s19, %s157_s19 }
   0x7   :  { %34 = vadd.xlane.f32.xlu0 %v33_v8  ;;  %v47_v16 = vsub.s32 %v44_v13, %v46_v14  ;;  %p180_p0 = scmp.ne.s32.totalorder %s157_s19, %s179_s20  ;;  %p185_p2 = scmp.lt.s32.totalorder %s179_s20, %s179_s20 }
   0x9   :  { %p186_p3 = por %p185_p2, %p184_p1 }
   0xb   :  { %39 = vadd.xlane.f32.xlu0 %v38_v9  ;;  %v21_v20 = vld [vmem:[#allocation2] sm:$0x3]  ;;  %p187_p4 = pnand %p186_p3, %p180_p0 }
  0x90   :  { %v35_v15 = vpop.xlane.xlu0 %34 }
  0x91   :  { %v48_v18 = vrot.slane %v35_v15, %v47_v16 }
  0x94   :  { %v40_v17 = vpop.xlane.xlu0 %39 }
  0x95   :  { %v52_v19 = vrot.slane %v40_v17, %v47_v16 }
  0x97   :  { %v54_v21 = vsel %vm53_vm3, %v52_v19, %v48_v18 }
  0x98   :  { %v56_v22 = vadd.f32 %v54_v21, %v21_v20 }
  0x9a   :  { %58 = vst.msk [vmem:[#allocation2] sm:$0x3] %vm19_vm1, %v56_v22 }
  0xa1   :  { %v62_v23 = vld [vmem:[#allocation2] sm:$0x3] }
  0xa2   :  { %172 = vmatmul.mubr.msk.f32.vlgmr.msra.gmra.mxu0 %vm71_vm4, %v62_v23 }
 0x162   :  { %v144_v25 = vpop.f32.mrf.mxu0 }
 0x163   :  { %v145_v26 = vadd.f32 %v164_v24, %v144_v25 }
 0x164   :  { %v173_v27 = vpop.f32.mrf.mxu0 }
 0x165   :  { %149 = vst.msk [vmem:[#allocation3] sm:$0x3] %vm148_vm5, %v145_v26 }
 0x166   :  { %190 = shalt.err (!%p187_p4)
}
 0x167   :  { %159 = dma.vmem_to_hbm [thread:$0]  %s157_s19, 32, %s249_s3, [#allocation4]  }
 0x168   :  { %199 = dma.done.wait [#allocation4], 32  }
 0x169   :  { %200 = vsyncadd [#allocation4], 4294967264 }
 0x16a   :  { %163 = vsyncpa [#allocation4], 1 }

</bundles_post_ra>
